<compile_context>
chip_gen: v7x
topology: tpu7x:2x2x1
jax: 0.10.0
libtpu: 0.0.40
codegen_flags: <defaults>
</compile_context>

<pallas_src>
import math

import jax
import jax.numpy as jnp
from jax.experimental import pallas as pl
from jax.experimental.pallas import tpu as pltpu


_LANE = 128    # lane width (last dim must be a multiple of this for density)
_SUBLANE = 8   # sublane pack (second-to-last dim granularity)


def _round_up(x, m):
    return ((x + m - 1) // m) * m


def gene_decoder_kernel(z_ref,
                        w1_ref, b1_ref,
                        w2_ref, b2_ref,
                        w3_ref, b3_ref,
                        out_ref,
                        h2_ref):
    """Fused GeneDecoder forward for one (batch-tile, output-N-tile) grid cell.

    grid = (batch_tiles, out_n_tiles). The hidden activations depend only on
    the batch tile, so they are computed once per batch tile (j == 0) and kept
    in a VMEM scratch reused for every output-N tile. Dropout is identity
    (eval mode); activation is ReLU.
    """
    j = pl.program_id(1)

    @pl.when(j == 0)
    def _():
        z = z_ref[...]
        # Hidden layer 1: Linear (+bias) -> ReLU.  f32 MXU accumulation.
        h1 = jnp.dot(z, w1_ref[...], preferred_element_type=jnp.float32)
        h1 = jnp.maximum(h1 + b1_ref[...].astype(jnp.float32), 0.0)
        # Hidden layer 2: Linear (+bias) -> ReLU.
        h2 = jnp.dot(h1.astype(w2_ref.dtype), w2_ref[...],
                     preferred_element_type=jnp.float32)
        h2 = jnp.maximum(h2 + b2_ref[...].astype(jnp.float32), 0.0)
        h2_ref[...] = h2.astype(h2_ref.dtype)

    # Output layer: Linear only, over the current N tile of the (largest)
    # weight, so w3 never has to be fully VMEM-resident.
    out = jnp.dot(h2_ref[...], w3_ref[...], preferred_element_type=jnp.float32)
    out = out + b3_ref[...].astype(jnp.float32)
    out_ref[...] = out.astype(out_ref.dtype)


def gene_decoder_forward(latent_z, params, *, block_b=256, block_n=512,
                         compute_dtype=jnp.bfloat16):
    """GeneDecoder forward as one pallas_call over a (batch, out_N) grid.

    block_b: batch-tile rows (multiple of 8; 256/512 for production batches).
    block_n: output-feature tile (multiple of 128; 512-2048 for gene counts).
    compute_dtype: dtype fed to the MXU (bf16 recommended); accumulation and
                   the bias/ReLU epilogue stay f32; output keeps input dtype.
    """
    (w1, b1), (w2, b2), (w3, b3) = params
    batch, latent = latent_z.shape
    h1_dim, h2_dim, out_dim = w1.shape[1], w2.shape[1], w3.shape[1]
    out_dtype = latent_z.dtype

    assert block_b % _SUBLANE == 0, "block_b must be a multiple of 8"
    assert block_n % _LANE == 0, "block_n must be a multiple of 128"

    # Clamp tiles to (padded) problem size, then pad to lane/sublane density.
    block_b = min(block_b, _round_up(batch, block_b if batch >= block_b
                                     else 2 * _SUBLANE))
    block_n = min(block_n, _round_up(out_dim, _LANE))
    bp = _round_up(batch, block_b)
    h1p = _round_up(h1_dim, _LANE)
    h2p = _round_up(h2_dim, _LANE)
    np_ = _round_up(out_dim, block_n)

    def pad2(a, rows, cols):
        return jnp.pad(a, ((0, rows - a.shape[0]),
                           (0, cols - a.shape[1]))).astype(compute_dtype)

    # TODO(synk): in production, pre-pad + pre-cast the params once at build
    # time instead of per call.
    z_p = pad2(latent_z, bp, latent)
    w1_p, b1_p = pad2(w1, latent, h1p), pad2(b1, 1, h1p)
    w2_p, b2_p = pad2(w2, h1p, h2p), pad2(b2, 1, h2p)
    w3_p, b3_p = pad2(w3, h2p, np_), pad2(b3, 1, np_)

    grid = (bp // block_b, np_ // block_n)

    in_specs = [
        pl.BlockSpec((block_b, latent), lambda i, j: (i, 0)),   # z: per batch tile
        pl.BlockSpec((latent, h1p), lambda i, j: (0, 0)),       # w1: resident
        pl.BlockSpec((1, h1p), lambda i, j: (0, 0)),            # b1: resident
        pl.BlockSpec((h1p, h2p), lambda i, j: (0, 0)),          # w2: resident
        pl.BlockSpec((1, h2p), lambda i, j: (0, 0)),            # b2: resident
        pl.BlockSpec((h2p, block_n), lambda i, j: (0, j)),      # w3: tiled on N
        pl.BlockSpec((1, block_n), lambda i, j: (0, j)),        # b3: tiled on N
    ]
    out_specs = pl.BlockSpec((block_b, block_n), lambda i, j: (i, j))

    itemsize = jnp.dtype(compute_dtype).itemsize
    out_itemsize = jnp.dtype(out_dtype).itemsize
    flops = 2 * bp * (latent * h1p + h1p * h2p + h2p * np_)
    bytes_accessed = (
        (z_p.size + w1_p.size + b1_p.size + w2_p.size + b2_p.size
         + w3_p.size + b3_p.size) * itemsize
        + bp * np_ * out_itemsize)

    # Per-step VMEM footprint: resident small weights + 2x double-buffered
    # streamed tiles + h2 scratch; 2x headroom, clamped so it stays legal on
    # v7x (64 MiB physical VMEM).
    resident = (w1_p.size + b1_p.size + w2_p.size + b2_p.size) * itemsize
    streamed = 2 * ((block_b * latent + h2p * block_n + block_n) * itemsize
                    + block_b * block_n * out_itemsize)
    scratch = block_b * h2p * itemsize
    vmem_bytes = int(min(max(2 * (resident + streamed + scratch), 16 * 2**20),
                         48 * 2**20))

    out_padded = pl.pallas_call(
        gene_decoder_kernel,
        out_shape=jax.ShapeDtypeStruct((bp, np_), out_dtype),
        grid_spec=pltpu.PrefetchScalarGridSpec(
            num_scalar_prefetch=0,
            grid=grid,
            in_specs=in_specs,
            out_specs=out_specs,
            scratch_shapes=[pltpu.VMEM((block_b, h2p), compute_dtype)],
        ),
        compiler_params=pltpu.CompilerParams(
            dimension_semantics=("parallel", "arbitrary"),
            vmem_limit_bytes=vmem_bytes,
        ),
        cost_estimate=pl.CostEstimate(flops=flops, transcendentals=0,
                                      bytes_accessed=bytes_accessed),
    )(z_p, w1_p, b1_p, w2_p, b2_p, w3_p, b3_p)

    return out_padded[:batch, :out_dim]


def init_linear_params(key, in_features, out_features, dtype=jnp.float32):
    """nn.Linear default init (uniform +-1/sqrt(fan_in)); W stored [in, out]."""
    k_w, k_b = jax.random.split(key)
    bound = 1.0 / math.sqrt(in_features)
    w = jax.random.uniform(k_w, (in_features, out_features), dtype,
                           minval=-bound, maxval=bound)
    b = jax.random.uniform(k_b, (1, out_features), dtype,
                           minval=-bound, maxval=bound)
    return w, b


def build_gene_decoder_params(key, latent_size, hidden_sizes, output_size):
    """GeneDecoder.__init__: num_units = [latent] + hidden_sizes[::-1] + [output]."""
    num_units = [latent_size] + hidden_sizes[::-1] + [output_size]
    keys = jax.random.split(key, len(num_units) - 1)
    return [init_linear_params(keys[i - 1], num_units[i - 1], num_units[i])
            for i in range(1, len(num_units))]


def reference_forward(latent_z, params, compute_dtype=jnp.float32):
    """Pure-JAX reference with the same mixed-precision recipe as the kernel."""
    h = latent_z.astype(compute_dtype)
    n = len(params)
    for i, (w, b) in enumerate(params):
        h = jnp.dot(h, w.astype(compute_dtype),
                    preferred_element_type=jnp.float32)
        h = h + b.astype(compute_dtype).astype(jnp.float32)
        if i < n - 1:
            h = jnp.maximum(h, 0.0).astype(compute_dtype)  # dropout = identity
    return h.astype(latent_z.dtype)


if __name__ == "__main__":
    # Small shapes consistent with the module; tiles chosen so the toy problem
    # still exercises a real (2 x 3) grid.  Production: block_b in {256, 512},
    # block_n in {512, 2048}.
    batch = 20
    latent_size = 16
    hidden_sizes = [64, 32]     # reversed inside -> [32, 64]
    output_size = 300

    key = jax.random.PRNGKey(0)
    k_params, k_z = jax.random.split(key)
    params = build_gene_decoder_params(k_params, latent_size, hidden_sizes,
                                       output_size)
    latent_z = jax.random.normal(k_z, (batch, latent_size), dtype=jnp.float32)

    # f32 compute path: strict functional check.
    out_f32 = jax.block_until_ready(
        gene_decoder_forward(latent_z, params, block_b=16, block_n=128,
                             compute_dtype=jnp.float32))
    ref_f32 = reference_forward(latent_z, params, compute_dtype=jnp.float32)
    assert out_f32.shape == (batch, output_size)
    assert jnp.allclose(out_f32, ref_f32, atol=1e-4, rtol=1e-4), \
        "f32 mismatch vs reference"

    # bf16 MXU path (default for v5e/v6e/v7x): loose check vs bf16 reference.
    out_bf16 = jax.block_until_ready(
        gene_decoder_forward(latent_z, params, block_b=16, block_n=128,
                             compute_dtype=jnp.bfloat16))
    ref_bf16 = reference_forward(latent_z, params, compute_dtype=jnp.bfloat16)
    assert out_bf16.shape == (batch, output_size)
    assert jnp.allclose(out_bf16, ref_bf16, atol=3e-2, rtol=3e-2), \
        "bf16 mismatch vs reference"

    print("KERNEL_OK")
</pallas_src>

<mosaic_0001>
module attributes {stable_mosaic.version = 11 : i64} {
  func.func @gene_decoder_kernel(%arg0: i32, %arg1: i32, %arg2: memref<16x16xf32, #tpu.memory_space<vmem>>, %arg3: memref<16x128xf32, #tpu.memory_space<vmem>>, %arg4: memref<1x128xf32, #tpu.memory_space<vmem>>, %arg5: memref<128x128xf32, #tpu.memory_space<vmem>>, %arg6: memref<1x128xf32, #tpu.memory_space<vmem>>, %arg7: memref<128x128xf32, #tpu.memory_space<vmem>>, %arg8: memref<1x128xf32, #tpu.memory_space<vmem>>, %arg9: memref<16x128xf32, #tpu.memory_space<vmem>>, %arg10: memref<16x128xf32, #tpu.memory_space<vmem>>) attributes {dimension_semantics = [#tpu.dimension_semantics<parallel>, #tpu.dimension_semantics<arbitrary>], iteration_bounds = array<i64: 2, 3>, scalar_prefetch = 0 : i64, scratch_operands = 1 : i64, tpu.core_type = #tpu.core_type<tc>, window_params = [{transform_indices = @transform_0, window_bounds = array<i64: 16, 16>}, {pipeline_mode = #tpu.pipeline_mode<synchronous>, transform_indices = @transform_1, window_bounds = array<i64: 16, 128>}, {pipeline_mode = #tpu.pipeline_mode<synchronous>, transform_indices = @transform_2, window_bounds = array<i64: 1, 128>}, {pipeline_mode = #tpu.pipeline_mode<synchronous>, transform_indices = @transform_3, window_bounds = array<i64: 128, 128>}, {pipeline_mode = #tpu.pipeline_mode<synchronous>, transform_indices = @transform_4, window_bounds = array<i64: 1, 128>}, {transform_indices = @transform_5, window_bounds = array<i64: 128, 128>}, {transform_indices = @transform_6, window_bounds = array<i64: 1, 128>}, {transform_indices = @transform_7, window_bounds = array<i64: 16, 128>}]} {
    %c0_i32 = arith.constant 0 : i32
    %0 = arith.cmpi eq, %arg1, %c0_i32 : i32
    %1 = arith.extui %0 : i1 to i32
    %c0_i32_0 = arith.constant 0 : i32
    %2 = arith.cmpi ne, %1, %c0_i32_0 : i32
    scf.if %2 {
      %c0_8 = arith.constant 0 : index
      %c0_9 = arith.constant 0 : index
      %10 = vector.load %arg2[%c0_8, %c0_9] : memref<16x16xf32, #tpu.memory_space<vmem>>, vector<16x16xf32>
      %c0_10 = arith.constant 0 : index
      %c0_11 = arith.constant 0 : index
      %11 = vector.load %arg3[%c0_10, %c0_11] : memref<16x128xf32, #tpu.memory_space<vmem>>, vector<16x128xf32>
      %cst_12 = arith.constant dense<0.000000e+00> : vector<16x128xf32>
      %12 = tpu.matmul %10, %11, %cst_12 {dimension_numbers = #tpu.dot_dimension_numbers<[1], [0], [0], [1], [0, 0, 1, 1], [], []>} : vector<16x16xf32>, vector<16x128xf32>, vector<16x128xf32> -> vector<16x128xf32>
      %c0_13 = arith.constant 0 : index
      %c0_14 = arith.constant 0 : index
      %13 = vector.load %arg4[%c0_13, %c0_14] : memref<1x128xf32, #tpu.memory_space<vmem>>, vector<1x128xf32>
      %14 = vector.broadcast %13 : vector<1x128xf32> to vector<16x128xf32>
      %15 = arith.addf %12, %14 : vector<16x128xf32>
      %cst_15 = arith.constant 0.000000e+00 : f32
      %16 = vector.broadcast %cst_15 : f32 to vector<16x128xf32>
      %17 = arith.maximumf %15, %16 : vector<16x128xf32>
      %c0_16 = arith.constant 0 : index
      %c0_17 = arith.constant 0 : index
      %18 = vector.load %arg5[%c0_16, %c0_17] : memref<128x128xf32, #tpu.memory_space<vmem>>, vector<128x128xf32>
      %cst_18 = arith.constant dense<0.000000e+00> : vector<16x128xf32>
      %19 = tpu.matmul %17, %18, %cst_18 {dimension_numbers = #tpu.dot_dimension_numbers<[1], [0], [0], [1], [0, 0, 1, 1], [], []>} : vector<16x128xf32>, vector<128x128xf32>, vector<16x128xf32> -> vector<16x128xf32>
      %c0_19 = arith.constant 0 : index
      %c0_20 = arith.constant 0 : index
      %20 = vector.load %arg6[%c0_19, %c0_20] : memref<1x128xf32, #tpu.memory_space<vmem>>, vector<1x128xf32>
      %21 = vector.broadcast %20 : vector<1x128xf32> to vector<16x128xf32>
      %22 = arith.addf %19, %21 : vector<16x128xf32>
      %cst_21 = arith.constant 0.000000e+00 : f32
      %23 = vector.broadcast %cst_21 : f32 to vector<16x128xf32>
      %24 = arith.maximumf %22, %23 : vector<16x128xf32>
      %c0_22 = arith.constant 0 : index
      %c0_23 = arith.constant 0 : index
      %25 = vector.load %arg10[%c0_22, %c0_23] : memref<16x128xf32, #tpu.memory_space<vmem>>, vector<16x128xf32>
      tpu.vector_store %arg10[%c0_22, %c0_23], %24 {strides = array<i32>} : memref<16x128xf32, #tpu.memory_space<vmem>>, vector<16x128xf32>,
    } else {
    }
    %c0 = arith.constant 0 : index
    %c0_1 = arith.constant 0 : index
    %3 = vector.load %arg10[%c0, %c0_1] : memref<16x128xf32, #tpu.memory_space<vmem>>, vector<16x128xf32>
    %c0_2 = arith.constant 0 : index
    %c0_3 = arith.constant 0 : index
    %4 = vector.load %arg7[%c0_2, %c0_3] : memref<128x128xf32, #tpu.memory_space<vmem>>, vector<128x128xf32>
    %cst = arith.constant dense<0.000000e+00> : vector<16x128xf32>
    %5 = tpu.matmul %3, %4, %cst {dimension_numbers = #tpu.dot_dimension_numbers<[1], [0], [0], [1], [0, 0, 1, 1], [], []>} : vector<16x128xf32>, vector<128x128xf32>, vector<16x128xf32> -> vector<16x128xf32>
    %c0_4 = arith.constant 0 : index
    %c0_5 = arith.constant 0 : index
    %6 = vector.load %arg8[%c0_4, %c0_5] : memref<1x128xf32, #tpu.memory_space<vmem>>, vector<1x128xf32>
    %7 = vector.broadcast %6 : vector<1x128xf32> to vector<16x128xf32>
    %8 = arith.addf %5, %7 : vector<16x128xf32>
    %c0_6 = arith.constant 0 : index
    %c0_7 = arith.constant 0 : index
    %9 = vector.load %arg9[%c0_6, %c0_7] : memref<16x128xf32, #tpu.memory_space<vmem>>, vector<16x128xf32>
    tpu.vector_store %arg9[%c0_6, %c0_7], %8 {strides = array<i32>} : memref<16x128xf32, #tpu.memory_space<vmem>>, vector<16x128xf32>,
    return
  }
  func.func @transform_0(%arg0: i32, %arg1: i32) -> (i32, i32) {
    %c0_i32 = arith.constant 0 : i32
    %c0_i32_0 = arith.constant 0 : i32
    return %arg0, %c0_i32 : i32, i32
  }
  func.func @transform_1(%arg0: i32, %arg1: i32) -> (i32, i32) {
    %c0_i32 = arith.constant 0 : i32
    %c0_i32_0 = arith.constant 0 : i32
    %c0_i32_1 = arith.constant 0 : i32
    return %c0_i32, %c0_i32_0 : i32, i32
  }
  func.func @transform_2(%arg0: i32, %arg1: i32) -> (i32, i32) {
    %c0_i32 = arith.constant 0 : i32
    %c0_i32_0 = arith.constant 0 : i32
    %c0_i32_1 = arith.constant 0 : i32
    return %c0_i32, %c0_i32_0 : i32, i32
  }
  func.func @transform_3(%arg0: i32, %arg1: i32) -> (i32, i32) {
    %c0_i32 = arith.constant 0 : i32
    %c0_i32_0 = arith.constant 0 : i32
    %c0_i32_1 = arith.constant 0 : i32
    return %c0_i32, %c0_i32_0 : i32, i32
  }
  func.func @transform_4(%arg0: i32, %arg1: i32) -> (i32, i32) {
    %c0_i32 = arith.constant 0 : i32
    %c0_i32_0 = arith.constant 0 : i32
    %c0_i32_1 = arith.constant 0 : i32
    return %c0_i32, %c0_i32_0 : i32, i32
  }
  func.func @transform_5(%arg0: i32, %arg1: i32) -> (i32, i32) {
    %c0_i32 = arith.constant 0 : i32
    %c0_i32_0 = arith.constant 0 : i32
    return %c0_i32, %arg1 : i32, i32
  }
  func.func @transform_6(%arg0: i32, %arg1: i32) -> (i32, i32) {
    %c0_i32 = arith.constant 0 : i32
    %c0_i32_0 = arith.constant 0 : i32
    return %c0_i32, %arg1 : i32, i32
  }
  func.func @transform_7(%arg0: i32, %arg1: i32) -> (i32, i32) {
    %c0_i32 = arith.constant 0 : i32
    return %arg0, %arg1 : i32, i32
  }
}

</mosaic_0001>

<bundles_post_ra>
// kernel: tpu_custom_call.1
= control target key start
LH: loop header
LB: loop body
LE: loop exit
PB: predicated region body
PF: predicated region fallthrough
CT: control target
= control target key end

     0   :  { %s1698_s0 = inlined_call_operand.vmem [shape: f32[32,16], index: 0, kind: input, shape index: {}]   ;;  %s1699_s1 = inlined_call_operand.vmem [shape: f32[16,128], index: 1, kind: input, shape index: {}]   ;;  %s1700_s2 = inlined_call_operand.vmem [shape: f32[1,128], index: 2, kind: input, shape index: {}]   ;;  %s1701_s3 = inlined_call_operand.hbm [shape: f32[128,128], index: 3, kind: input, shape index: {}]   ;;  %s1702_s4 = inlined_call_operand.vmem [shape: f32[1,128], index: 4, kind: input, shape index: {}]   ;;  %s1703_s5 = inlined_call_operand.hbm [shape: f32[128,384], index: 5, kind: input, shape index: {}]   ;;  %s1704_s6 = inlined_call_operand.vmem [shape: f32[1,384], index: 6, kind: input, shape index: {}]   ;;  %s1705_s7 = inlined_call_operand.hbm [shape: f32[32,384], index: 7, kind: output, shape index: {}]  }
   0x1   :  { %1723 = sst [smem:[#allocation17_spill]] %s1701_s3 }
   0x2   :  { %1724 = sst [smem:[#allocation18_spill]] %s1702_s4 }
   0x3   :  { %1725 = sst [smem:[#allocation19_spill]] %s1703_s5 }
   0x4   :  { %1726 = sst [smem:[#allocation20_spill]] %s1705_s7 }
   0x5   :  { %12 = vsyncpa [#allocation4], 0 }
   0x6   :  { %13 = vsyncpa [#allocation7], 0 }
   0x7   :  { %15 = vsyncpa [#allocation7 + $0x1], 0 }
   0x8   :  { %16 = vsyncpa [#allocation5], 0 }
   0x9   :  { %18 = vsyncpa [#allocation5 + $0x1], 0  ;;  %s1365_s24 = smov 0   ;;  %s1367_s25 = smov 0  }
   0xa   :  { %s1369_s26 = smov 0   ;;  %s1371_s27 = smov 0  }
   0xb   :  { %s1373_s28 = smov 0   ;;  %s1375_s29 = smov 0  }
   0xc   :  { %s1377_s30 = smov 0   ;;  %s1379_s8 = smov 0  }
   0xd   :  { %s1381_s9 = smov 0   ;;  %s1383_s10 = smov 0  }
   0xe   :  { %s1385_s11 = smov 0  }
   0xf LB: > { %1727 = sst [smem:[#allocation12_spill]] %s1274_s24  ;;  %s800_s12 = sadd.s32 4294967295, %s1314_s11   ;;  %s1314_s11 = sphi %s1385_s11, %s24_s11   ;;  %s1310_s10 = sphi %s1383_s10, %s1769_s10   ;;  %s1306_s9 = sphi %s1381_s9, %s1768_s9   ;;  %s1302_s8 = sphi %s1379_s8, %s1767_s8   ;;  %s1298_s30 = sphi %s1377_s30, %s1766_s30   ;;  %s1294_s29 = sphi %s1375_s29, %s1765_s29   ;;  %s1290_s28 = sphi %s1373_s28, %s1764_s28   ;;  %s1286_s27 = sphi %s1371_s27, %s1763_s27   ;;  %s1282_s26 = sphi %s1369_s26, %s1762_s26   ;;  %s1278_s25 = sphi %s1367_s25, %s1761_s25   ;;  %s1274_s24 = sphi %s1365_s24, %s1760_s24  }
  0x10   : > { %1728 = sst [smem:[#allocation13_spill]] %s1314_s11  ;;  %s801_s13 = sadd.s32 4294967294, %s1314_s11  }
  0x11   : > { %p160_p0 = scmp.ne.s32.totalorder %s1294_s29, %s1290_s28  ;;  %p161_p1 = scmp.eq.s32.totalorder %s1314_s11, 0 }
  0x12   : > { %p166_p2 = scmp.ne.s32.totalorder %s1290_s28, %s1286_s27  ;;  %p1425_p3 = scmp.eq.s32.totalorder %s800_s12, 0 }
  0x13   : > { %p1430_p4 = por %p161_p1, %p160_p0  ;;  %p217_p5 = scmp.ne.s32.totalorder %s1282_s26, %s1278_s25 }
  0x14   : > { %s1729_s15 = scalar_select %p1425_p3, 1, 0 }
  0x15   : > { %p1438_p6 = por %p1425_p3, %p166_p2  ;;  %p218_p7 = scmp.eq.s32.totalorder %s800_s12, 5 }
  0x16   : > { %p223_p8 = scmp.ne.s32.totalorder %s1278_s25, %s1274_s24  ;;  %p224_p9 = scmp.eq.s32.totalorder %s801_s13, 5 }
  0x17   : > { %s1731_s18 = scalar_select %p1438_p6, 1, 0 }
  0x18   : > { %p1444_p10 = por %p218_p7, %p217_p5  ;;  %p802_p11 = scmp.ge.s32.totalorder %s1314_s11, 1 }
  0x19   : > { %p1449_p12 = por %p224_p9, %p223_p8  ;;  %p231_p13 = scmp.lt.s32.totalorder %s1314_s11, 7 }
  0x1a   : > { %s1732_s19 = scalar_select %p1444_p10, 1, 0 }
  0x1b   : > { %s1734_s20 = scalar_select %p1449_p12, 1, 0 }
  0x1c   : > { %1733 = sst [smem:[#allocation14_spill]] %s1732_s19  ;;  %p1454_p0 = pnand %p802_p11, %p231_p13 }
  0x1d   : > { %1735 = sst [smem:[#allocation15_spill]] %s1734_s20  ;;  %s1316_s22 = smov [#allocation3]  }
  0x1e   : > { %s1736_s21 = scalar_select %p1454_p0, 1, 0 }
  0x1f   : > { %s249_s23 = sshll.u32 %s1316_s22, 4  ;;  %p1019_p1 = pneg %p1454_p0  ;;  %s250_s23 = int_to_ptr.vmem [resolvable:$true] %s249_s23 }
  0x20   : > { %p1032_p2 = scmp.lt.s32.totalorder %s1314_s11, 6  ;;  %s1739_s3 = sld [smem:[#allocation17_spill]] }
  0x21   : > { %p1463_p5 = pnand %p1019_p1, %p1425_p3 }
  0x22   : > { %p1469_p7 = pnand %p1032_p2, %p1430_p4 }
  0x23   : > { %p1132_p9 = pneg %p1463_p5 }
  0x24   : > { %s1738_s12 = scalar_select %p1469_p7, 1, 0 }
  0x26   : > { %s1130_s14 = scalar_lea.hbm %s1739_s3, 2048 }
  0x27   : > { %p1131_p8 = scmp.ne.s32.totalorder %s1739_s3, %s1130_s14  ;;  %p1137_p1 = scmp.lt.u32.totalorder %s1130_s14, %s1739_s3 }
  0x29   : > { %p1133_p11 = pnand %p1132_p9, %p1131_p8 }
  0x2b   : > { %p1134_p13 = pneg %p1133_p11 }
  0x2d   : > { %p1139_p4 = pnand %p1137_p1, %p1134_p13 }
  0x2f   : > { %1142 = shalt.err (!%p1139_p4)
}
  0x30   : > { %s1143_s17 = scalar_lea.vmem %s250_s23, 2048  ;;  %p1151_p6 = scmp.lt.s32.totalorder %s250_s23, %s250_s23 }
  0x31   : > { %p1144_p2 = scmp.ne.s32.totalorder %s250_s23, %s1143_s17  ;;  %p1152_p3 = scmp.lt.s32.totalorder %s1143_s17, %s1143_s17 }
  0x33   : > { %p1146_p12 = pnand %p1144_p2, %p1132_p9  ;;  %p1153_p0 = por %p1152_p3, %p1151_p6 }
  0x35   : > { %p1147_p10 = pneg %p1146_p12 }
  0x37   : > { %p1154_p7 = pnand %p1153_p0, %p1147_p10 }
  0x39   : > { %1157 = shalt.err (!%p1154_p7)
}
  0x3a   : > { %s1717_s16 = smov 128   ;;  %s1718_s24 = smov 8  }
  0x3b   : > { %1022 = dma.hbm_to_vmem [thread:$0]  (!%p1463_p5), %s1739_s3, 2048, %s250_s23, [#allocation4], %s1717_s16, %s1717_s16, %s1718_s24  }
  0x3c   : > { %s33_s20 = sadd.s32 1, %s1306_s9  ;;  %s36_s13 = sadd.s32 1, %s1310_s10 }
  0x3d   : > { %p34_p3 = scmp.ge.s32.totalorder %s33_s20, 3  ;;  %s275_s22 = sand.u32 1, %s1294_s29  }
  0x3e   : > { %s805_s17 = sshll.u32 %s275_s22, 7  ;;  %s806_s7 = sshll.u32 %s1306_s9, 7 }
  0x3f   : > { %s1771_s20 = smov (%p34_p3, %s33_s20), 0  ;;  %s1773_s13 = smov (!%p34_p3, %s36_s13), %s1310_s10 }
  0x40   : > { %1740 = sst [smem:[#allocation16_spill]] %s1771_s20  ;;  %s150_s27 = ssub.s32 %s1306_s9, %s1771_s20 }
  0x41   : > { %p38_p6 = scmp.ge.s32.totalorder %s1773_s13, 2  ;;  %p151_p10 = scmp.eq.s32.totalorder %s150_s27, 0 }
  0x42   : > { %s279_s11 = scalar_lea.vmem [#allocation6], %s805_s17  ;;  %s1741_s23 = sadd.s32 1, %s1294_s29 }
  0x43   : > { %s285_s14 = sshll.u32 %s279_s11, 4  ;;  %s1775_s13 = smov (%p38_p6, %s1773_s13), 0  ;;  %s1517_s14 = int_to_ptr.vmem [resolvable:$true] %s285_s14 }
  0x44   : > { %s1506_s16 = scalar_select %p151_p10, %s1294_s29, %s1741_s23  }
  0x45   : > { %s202_s24 = ssub.s32 %s1310_s10, %s1775_s13  ;;  %s1742_s5 = sld [smem:[#allocation19_spill]] }
  0x46   : > { %s1515_s20 = sor.u32 %s202_s24, %s150_s27  ;;  %s1520_s17 = scalar_lea.sflag [#allocation7], %s275_s22 }
  0x47   : > { %p205_p12 = scmp.eq.s32.totalorder %s1515_s20, 0  ;;  %p1743_p5 = scmp.ne.s32.totalorder %s1738_s12, 0 }
  0x49   : > { %p1160_p7 = pneg %p1743_p5 }
  0x4b   : > { %s1513_s4 = scalar_lea.hbm %s1742_s5, %s806_s7  ;;  %s1163_s19 = scalar_lea.hbm %s1742_s5, 6144 }
  0x4c   : > { %s1158_s11 = scalar_lea.hbm %s1513_s4, 2048  ;;  %p1164_p11 = scmp.lt.u32.totalorder %s1513_s4, %s1742_s5 }
  0x4d   : > { %p1159_p0 = scmp.ne.s32.totalorder %s1513_s4, %s1158_s11  ;;  %p1165_p13 = scmp.lt.u32.totalorder %s1163_s19, %s1158_s11 }
  0x4e   : > { %p1167_p4 = scmp.lt.u32.totalorder %s1158_s11, %s1513_s4 }
  0x4f   : > { %p1161_p8 = pnand %p1160_p7, %p1159_p0  ;;  %p1166_p1 = por %p1165_p13, %p1164_p11 }
  0x51   : > { %p1162_p9 = pneg %p1161_p8  ;;  %p1168_p2 = por %p1167_p4, %p1166_p1 }
  0x53   : > { %p1169_p3 = pnand %p1168_p2, %p1162_p9 }
  0x55   : > { %1172 = shalt.err (!%p1169_p3)
}
  0x56   : > { %s1173_s22 = scalar_lea.vmem %s1517_s14, 2048  ;;  %s1319_s23 = smov [#allocation6]  }
  0x57   : > { %p1174_p6 = scmp.ne.s32.totalorder %s1517_s14, %s1173_s22  ;;  %s1178_s3 = sshll.u32 %s1319_s23, 4  ;;  %s1179_s3 = int_to_ptr.vmem [resolvable:$false] %s1178_s3 }
  0x58   : > { %s1180_s7 = scalar_lea.vmem %s1179_s3, 4096  ;;  %p1181_p8 = scmp.lt.s32.totalorder %s1517_s14, %s1179_s3 }
  0x59   : > { %p1176_p10 = pnand %p1174_p6, %p1160_p7  ;;  %p1182_p11 = scmp.lt.s32.totalorder %s1180_s7, %s1173_s22 }
  0x5b   : > { %p1177_p0 = pneg %p1176_p10  ;;  %p1183_p13 = por %p1182_p11, %p1181_p8 }
  0x5d   : > { %p1184_p1 = pnand %p1183_p13, %p1177_p0 }
  0x5f   : > { %1187 = shalt.err (!%p1184_p1)
}
  0x60   : > { %s1320_s11 = smov 384   ;;  %s1744_s19 = smov 8  }
  0x61   : > { %s1745_s24 = smov 128   ;;  %s1746_s27 = sadd.s32 1, %s1282_s26 }
  0x62   : > { %1026 = dma.hbm_to_vmem [thread:$0]  (!%p1743_p5), %s1513_s4, 2048, %s1517_s14, %s1520_s17, %s1320_s11, %s1745_s24, %s1744_s19  }
  0x63   : > { %s1555_s23 = scalar_select %p205_p12, %s1282_s26, %s1746_s27  }
  0x64   : > { %p1747_p7 = scmp.ne.s32.totalorder %s1736_s21, 0 }
  0x65   : > { %p1748_p9 = scmp.ne.s32.totalorder (!%p1747_p7), %s1729_s15, 0 }
  0x66   : > { %303 = sbr.rel (%p1747_p7) target bundleno = 828 (0x33c), region = 48 }
  0x6d   : > { %1261 = dma.done.wait (%p1748_p9), [#allocation4], 2048  }
  0x6e   : > { %1263 = vsyncadd (%p1748_p9), [#allocation4], 4294965248  ;;  %s309_s12 = sand.u32 1, %s1290_s28   ;;  %p1749_p5 = scmp.ne.s32.totalorder %s1731_s18, 0 }
  0x6f   : > { %s809_s22 = sshll.u32 %s309_s12, 7  ;;  %s310_s3 = scalar_lea.sflag [#allocation7], %s309_s12 }
  0x70   : > { %s1564_s7 = scalar_lea.vmem [#allocation6], %s809_s22 }
  0x71   : > { %1265 = dma.done.wait (%p1749_p5), %s310_s3, 2048  }
  0x72   : > { %1267 = vsyncadd (%p1749_p5), %s310_s3, 4294965248  ;;  %s1722_s4 = sand.u32 1, %s1278_s25   ;;  %s811_s15 = sshll.u32 %s1302_s8, 1 }
  0x73   : > { %s810_s21 = sshll.u32 %s1722_s4, 4  ;;  %p353_p12 = scmp.lt.s32.totalorder %s811_s15, 3 }
  0x74   : > { %p358_p4 = scmp.lt.s32.totalorder %s1298_s30, 2  ;;  %s1585_s12 = scalar_lea.vmem [#allocation8], %s810_s21 }
  0x75   : > { %s1777_s15 = smov (!%p353_p12, %s811_s15), 3  ;;  %p813_p2 = scmp.ne.s32.totalorder %s1298_s30, 0 }
  0x76   : > { %s1576_s20 = scalar_select %p358_p4, %s1298_s30, 2 }
  0x77   : > { %s812_s14 = sshll.u32 %s1777_s15, 3  ;;  %365 = sbr.rel (%p813_p2) target bundleno = 562 (0x232), region = 60  ;;  %v368_v0 = vld [vmem:[%s1699_s1] sm:$0xff] (!%p813_p2)  ;;  %v369_v1 = vld [vmem:[%s1699_s1 + $0x8] sm:$0xff] (!%p813_p2)  ;;  %vm377_vm0 = vcmask (!%p813_p2), 130048   ;;  %v461_v4 = vld [vmem:[#allocation3] sm:$0xff] (!%p813_p2) }
  0x78   : > { %s356_s18 = scalar_lea.vmem %s1698_s0, %s812_s14  ;;  %s360_s27 = scalar_lea.vmem %s1704_s6, %s1576_s20  ;;  %v942_v3 = vpack.c.bf16 (!%p813_p2), %v369_v1, %v368_v0  ;;  %v462_v5 = vld [vmem:[#allocation3 + $0x8] sm:$0xff] (!%p813_p2)  ;;  %v463_v7 = vld [vmem:[#allocation3 + $0x10] sm:$0xff] (!%p813_p2)  ;;  %v464_v8 = vld [vmem:[#allocation3 + $0x18] sm:$0xff] (!%p813_p2) }
  0x79   : > { %v366_v2 = vld [vmem:[%s356_s18] sm:$0xff] (!%p813_p2)  ;;  %v946_v6 = vpack.c.bf16 (!%p813_p2), %v462_v5, %v461_v4  ;;  %v950_v9 = vpack.c.bf16 (!%p813_p2), %v464_v8, %v463_v7  ;;  %v465_v10 = vld [vmem:[#allocation3 + $0x20] sm:$0xff] (!%p813_p2)  ;;  %v466_v11 = vld [vmem:[#allocation3 + $0x28] sm:$0xff] (!%p813_p2)  ;;  %s1750_s14 = sld [smem:[#allocation18_spill]] (!%p813_p2) }
  0x7a   : > { %869 = vmatprep.mubr.msk.f32.mxu0 (!%p813_p2), %vm377_vm0, %v366_v2  ;;  %943 = vmatprep.subr.bf16.mxu0 (!%p813_p2), %v942_v3  ;;  %v367_v12 = vld [vmem:[%s356_s18 + $0x8] sm:$0xff] (!%p813_p2)  ;;  %v954_v13 = vpack.c.bf16 (!%p813_p2), %v466_v11, %v465_v10  ;;  %v467_v14 = vld [vmem:[#allocation3 + $0x30] sm:$0xff] (!%p813_p2)  ;;  %v469_v17 = vld [vmem:[#allocation3 + $0x40] sm:$0xff] (!%p813_p2) }
  0x7b   : > { %945 = vmatpush3.bf16.msra.mxu0 (!%p813_p2), %v942_v3  ;;  %947 = vmatprep.subr.bf16.mxu1 (!%p813_p2), %v946_v6  ;;  %v468_v15 = vld [vmem:[#allocation3 + $0x38] sm:$0xff] (!%p813_p2)  ;;  %v470_v18 = vld [vmem:[#allocation3 + $0x48] sm:$0xff] (!%p813_p2)  ;;  %v471_v20 = vld [vmem:[#allocation3 + $0x50] sm:$0xff] (!%p813_p2) }
  0x7c   : > { %949 = vmatpush3.bf16.msra.mxu1 (!%p813_p2), %v946_v6  ;;  %v958_v16 = vpack.c.bf16 (!%p813_p2), %v468_v15, %v467_v14  ;;  %v962_v19 = vpack.c.bf16 (!%p813_p2), %v470_v18, %v469_v17  ;;  %v472_v21 = vld [vmem:[#allocation3 + $0x58] sm:$0xff] (!%p813_p2)  ;;  %v473_v23 = vld [vmem:[#allocation3 + $0x60] sm:$0xff] (!%p813_p2)  ;;  %v474_v24 = vld [vmem:[#allocation3 + $0x68] sm:$0xff] (!%p813_p2) }
  0x7d   : > { %951 = vmatprep.subr.bf16.mxu1 (!%p813_p2), %v950_v9  ;;  %v966_v22 = vpack.c.bf16 (!%p813_p2), %v472_v21, %v471_v20  ;;  %v970_v25 = vpack.c.bf16 (!%p813_p2), %v474_v24, %v473_v23  ;;  %v475_v26 = vld [vmem:[#allocation3 + $0x70] sm:$0xff] (!%p813_p2)  ;;  %v476_v27 = vld [vmem:[#allocation3 + $0x78] sm:$0xff] (!%p813_p2) }
  0x7e   : > { %870 = vmatmul.mubr.msk.f32.vlgmr.msra.gmra.mrb[0].mxu0 %vm377_vm0, %v367_v12  ;;  %v974_v28 = vpack.c.bf16 %v476_v27, %v475_v26  ;;  %v814_v29 = vld [vmem:[%s1700_s2] ss:$0 sm:$0xff] }
  0x7f   : > { %v817_v36 = vld [vmem:[%s1750_s14] ss:$0 sm:$0xff] }
  0x80   : > { %953 = vmatpush3.bf16.msra.mxu1 %v950_v9 }
  0x81   : > { %955 = vmatprep.subr.bf16.mxu1 %v954_v13 }
  0x84   : > { %957 = vmatpush3.bf16.msra.mxu1 %v954_v13 }
  0x85   : > { %959 = vmatprep.subr.bf16.mxu1 %v958_v16 }
  0x88   : > { %961 = vmatpush3.bf16.msra.mxu1 %v958_v16 }
  0x89   : > { %963 = vmatprep.subr.bf16.mxu1 %v962_v19 }
  0x8c   : > { %965 = vmatpush3.bf16.msra.mxu1 %v962_v19 }
  0x8d   : > { %967 = vmatprep.subr.bf16.mxu1 %v966_v22 }
  0x90   : > { %969 = vmatpush3.bf16.msra.mxu1 %v966_v22 }
  0x91   : > { %971 = vmatprep.subr.bf16.mxu1 %v970_v25 }
  0x94   : > { %973 = vmatpush3.bf16.msra.mxu1 %v970_v25 }
  0x95   : > { %975 = vmatprep.subr.bf16.mxu1 %v974_v28 }
  0x98   : > { %977 = vmatpush3.bf16.msra.mxu1 %v974_v28 }
 0x151   : > { %v871_v30 = vpop.f32.mrb[0].mxu0 }
 0x152   : > { %v456_v31 = vadd.f32 %v871_v30, %v814_v29  ;;  %v450_v32 = vpop.f32.mrb[1].mxu0 }
 0x153   : > { %v451_v33 = vadd.f32 %v814_v29, %v450_v32 }
 0x154   : > { %v460_v35 = vmax.f32 %v456_v31, 0.0 }
 0x155   : > { %v459_v34 = vmax.f32 %v451_v33, 0.0 }
 0x157   : > { %904 = vmatprep.mubr.f32.mxu1 %v459_v34 }
 0x158   : > { %905 = vmatmul.mubr.f32.vlgmr.msra.gmra.mrb[0].mxu1 %v460_v35 }
 0x22b   : > { %v906_v37 = vpop.f32.mrb[0].mxu1 }
 0x22c   : > { %v556_v38 = vadd.f32 %v906_v37, %v817_v36  ;;  %v550_v39 = vpop.f32.mrb[1].mxu1 }
 0x22d   : > { %v551_v40 = vadd.f32 %v817_v36, %v550_v39 }
 0x22e   : > { %v560_v41 = vmax.f32 %v556_v38, 0.0 }
 0x22f   : > { %v559_v42 = vmax.f32 %v551_v40, 0.0 }
 0x230   : > { %562 = vst [vmem:[#allocation2 + $0x8] sm:$0xff] %v560_v41 }
 0x231   : > { %561 = vst [vmem:[#allocation2] sm:$0xff] %v559_v42 }
 0x232 PF: > { %v565_v43 = vld [vmem:[%s1564_s7] sm:$0xff]  ;;  %v566_v44 = vld [vmem:[%s1564_s7 + $0x8] sm:$0xff]  ;;  %v567_v45 = vld [vmem:[%s1564_s7 + $0x10] sm:$0xff]  ;;  %s1010_s17 = smul.u32 6, %s1302_s8  ;;  %s1751_s11 = sld [smem:[#allocation14_spill]] }
 0x233   : > { %v978_v46 = vpack.c.bf16 %v566_v44, %v565_v43  ;;  %v568_v47 = vld [vmem:[%s1564_s7 + $0x18] sm:$0xff]  ;;  %v569_v49 = vld [vmem:[%s1564_s7 + $0x20] sm:$0xff]  ;;  %v570_v50 = vld [vmem:[%s1564_s7 + $0x28] sm:$0xff]  ;;  %s1752_s4 = sld [smem:[#allocation20_spill]] }
 0x234   : > { %v982_v48 = vpack.c.bf16 %v568_v47, %v567_v45  ;;  %v986_v51 = vpack.c.bf16 %v570_v50, %v569_v49  ;;  %v571_v53 = vld [vmem:[%s1564_s7 + $0x30] sm:$0xff]  ;;  %v572_v54 = vld [vmem:[%s1564_s7 + $0x38] sm:$0xff]  ;;  %v573_v56 = vld [vmem:[%s1564_s7 + $0x40] sm:$0xff]  ;;  %s678_s18 = sadd.s32 %s1298_s30, %s1010_s17  ;;  %s1753_s30 = sand.u32 1, %s1278_s25  }
 0x235   : > { %979 = vmatprep.subr.bf16.mxu0 %v978_v46  ;;  %v990_v55 = vpack.c.bf16 %v572_v54, %v571_v53  ;;  %v574_v57 = vld [vmem:[%s1564_s7 + $0x48] sm:$0xff]  ;;  %v575_v59 = vld [vmem:[%s1564_s7 + $0x50] sm:$0xff]  ;;  %v576_v60 = vld [vmem:[%s1564_s7 + $0x58] sm:$0xff]  ;;  %s822_s19 = sshll.u32 %s678_s18, 7  ;;  %s1637_s8 = scalar_lea.sflag [#allocation5], %s1753_s30 }
 0x236   : > { %981 = vmatpush3.bf16.msra.mxu0 %v978_v46  ;;  %v994_v58 = vpack.c.bf16 %v574_v57, %v573_v56  ;;  %v998_v61 = vpack.c.bf16 %v576_v60, %v575_v59  ;;  %v577_v62 = vld [vmem:[%s1564_s7 + $0x60] sm:$0xff]  ;;  %v578_v63 = vld [vmem:[%s1564_s7 + $0x68] sm:$0xff]  ;;  %v579_v1 = vld [vmem:[%s1564_s7 + $0x70] sm:$0xff] }
 0x237   : > { %983 = vmatprep.subr.bf16.mxu0 %v982_v48  ;;  %v1002_v0 = vpack.c.bf16 %v578_v63, %v577_v62  ;;  %v580_v2 = vld [vmem:[%s1564_s7 + $0x78] sm:$0xff]  ;;  %v818_v5 = vld [vmem:[%s360_s27] ss:$0 sm:$0xff]  ;;  %s681_s7 = sshll.u32 %s1585_s12, 4  ;;  %s1321_s27 = smov [#allocation8]   ;;  %s1631_s7 = int_to_ptr.vmem [resolvable:$true] %s681_s7 }
 0x238   : > { %v563_v52 = vld [vmem:[#allocation2] sm:$0xff]  ;;  %v1006_v3 = vpack.c.bf16 %v580_v2, %v579_v1  ;;  %v564_v4 = vld [vmem:[#allocation2 + $0x8] sm:$0xff]  ;;  %s1188_s20 = scalar_lea.vmem %s1631_s7, 256  ;;  %p1754_p6 = scmp.ne.s32.totalorder %s1751_s11, 0 }
 0x239   : > { %939 = vmatprep.mubr.f32.mxu0 %v563_v52  ;;  %s1629_s15 = scalar_lea.hbm %s1752_s4, %s822_s19  ;;  %p1189_p3 = scmp.ne.s32.totalorder %s1631_s7, %s1188_s20 }
 0x23a   : > { %985 = vmatpush3.bf16.msra.mxu0 %v982_v48  ;;  %s1192_s21 = sshll.u32 %s1321_s27, 4  ;;  %s1193_s21 = int_to_ptr.vmem [resolvable:$false] %s1192_s21 }
 0x23b   : > { %987 = vmatprep.subr.bf16.mxu0 %v986_v51  ;;  %p1190_p10 = pnand %p1189_p3, %p1754_p6  ;;  %s1194_s14 = scalar_lea.vmem %s1193_s21, 512 }
 0x23c   : > { %p1195_p8 = scmp.lt.s32.totalorder %s1631_s7, %s1193_s21  ;;  %p1196_p11 = scmp.lt.s32.totalorder %s1194_s14, %s1188_s20 }
 0x23d   : > { %p1191_p0 = pneg %p1190_p10 }
 0x23e   : > { %989 = vmatpush3.bf16.msra.mxu0 %v986_v51  ;;  %p1197_p13 = por %p1196_p11, %p1195_p8 }
 0x23f   : > { %991 = vmatprep.subr.bf16.mxu0 %v990_v55 }
 0x240   : > { %p1198_p1 = pnand %p1197_p13, %p1191_p0 }
 0x242   : > { %993 = vmatpush3.bf16.msra.mxu0 %v990_v55 }
 0x243   : > { %995 = vmatprep.subr.bf16.mxu0 %v994_v58 }
 0x246   : > { %997 = vmatpush3.bf16.msra.mxu0 %v994_v58 }
 0x247   : > { %999 = vmatprep.subr.bf16.mxu0 %v998_v61 }
 0x24a   : > { %1001 = vmatpush3.bf16.msra.mxu0 %v998_v61 }
 0x24b   : > { %1003 = vmatprep.subr.bf16.mxu0 %v1002_v0 }
 0x24e   : > { %1005 = vmatpush3.bf16.msra.mxu0 %v1002_v0 }
 0x24f   : > { %1007 = vmatprep.subr.bf16.mxu0 %v1006_v3 }
 0x252   : > { %1009 = vmatpush3.bf16.msra.mxu0 %v1006_v3 }
 0x255   : > { %940 = vmatmul.mubr.f32.vlgmr.msra.gmra.mrb[0].mxu0 %v564_v4 }
 0x328   : > { %v941_v6 = vpop.f32.mrb[0].mxu0 }
 0x329   : > { %v660_v7 = vadd.f32 %v941_v6, %v818_v5  ;;  %v654_v8 = vpop.f32.mrb[1].mxu0 }
 0x32a   : > { %v655_v9 = vadd.f32 %v818_v5, %v654_v8 }
 0x32b   : > { %664 = vst [vmem:[%s1585_s12 + $0x8] sm:$0xff] %v660_v7 }
 0x32c   : > { %663 = vst [vmem:[%s1585_s12] sm:$0xff] %v655_v9 }
 0x32d   : > { %1201 = shalt.err (!%p1198_p1)
}
 0x32e   : > { %s1202_s12 = scalar_lea.hbm %s1629_s15, 256  ;;  %s1206_s19 = scalar_lea.hbm %s1752_s4, 1536 }
 0x32f   : > { %p1203_p7 = scmp.ne.s32.totalorder %s1629_s15, %s1202_s12  ;;  %p1207_p12 = scmp.lt.u32.totalorder %s1629_s15, %s1752_s4 }
 0x330   : > { %p1208_p4 = scmp.lt.u32.totalorder %s1206_s19, %s1202_s12  ;;  %p1210_p3 = scmp.lt.u32.totalorder %s1202_s12, %s1629_s15 }
 0x331   : > { %p1204_p9 = pnand %p1203_p7, %p1754_p6 }
 0x332   : > { %p1209_p2 = por %p1208_p4, %p1207_p12 }
 0x333   : > { %p1205_p5 = pneg %p1204_p9 }
 0x334   : > { %p1211_p10 = por %p1210_p3, %p1209_p2 }
 0x336   : > { %p1212_p0 = pnand %p1211_p10, %p1205_p5 }
 0x338   : > { %1215 = shalt.err (!%p1212_p0)
}
 0x339   : > { %s1322_s3 = smov 128   ;;  %s1323_s5 = smov 384  }
 0x33a   : > { %s1324_s30 = smov 8  }
 0x33b   : > { %1017 = dma.vmem_to_hbm [thread:$0]  (%p1754_p6), %s1631_s7, 256, %s1629_s15, %s1637_s8, %s1322_s3, %s1323_s5, %s1324_s30  }
 0x33c PF: > { %s1755_s20 = sld [smem:[#allocation13_spill]]  ;;  %s1756_s27 = sld [smem:[#allocation12_spill]] }
 0x33d   : > { %s1757_s21 = sld [smem:[#allocation15_spill]] }
 0x342   : > { %p1034_p8 = scmp.ge.s32.totalorder %s1755_s20, 2  ;;  %s696_s14 = sand.u32 1, %s1756_s27  }
 0x343   : > { %p1758_p11 = scmp.ne.s32.totalorder %s1757_s21, 0  ;;  %s697_s12 = scalar_lea.sflag [#allocation5], %s696_s14 }
 0x345   : > { %p1028_p13 = pnand %p1034_p8, %p1758_p11 }
 0x347   : > { %1269 = dma.done.wait (!%p1028_p13), %s697_s12, 256  }
 0x348   : > { %1271 = vsyncadd (!%p1028_p13), %s697_s12, 4294967040  ;;  %s24_s11 = sadd.s32 1, %s1755_s20   ;;  %s1759_s7 = sld [smem:[#allocation16_spill]] }
 0x349   : > { %p21_p1 = scmp.ge.s32.totalorder %s24_s11, 8   ;;  %s1760_s24 = smov %s1278_s25 }
 0x34a   : > { %s1761_s25 = smov %s1282_s26  ;;  %s1762_s26 = smov %s1555_s23 }
 0x34b   : > { %s1763_s27 = smov %s1290_s28  ;;  %s1764_s28 = smov %s1294_s29 }
 0x34c   : > { %s1765_s29 = smov %s1506_s16  ;;  %s1766_s30 = smov %s1306_s9 }
 0x34d   : > { %s1767_s8 = smov %s1310_s10  ;;  %s1769_s10 = smov %s1775_s13 }
 0x34e   : > { %s1768_s9 = smov %s1759_s7  ;;  %23 = sbr.rel (!%p21_p1) target bundleno = 15 (0xf), region = 108 }
 0x355   :  { %702 = vsyncpa [#allocation4], 1 }
 0x356   :  { %704 = vsyncpa [#allocation4 + $0x1], 1 }
 0x357   :  { %705 = vsyncpa [#allocation7], 1 }
 0x358   :  { %707 = vsyncpa [#allocation7 + $0x1], 1 }
 0x359   :  { %708 = vsyncpa [#allocation5], 1 }
 0x35a   :  { %710 = vsyncpa [#allocation5 + $0x1], 1 }

</bundles_post_ra>
